<compile_context>
chip_gen: v6e
topology: v6e:2x2x1
jax: 0.10.0
libtpu: 0.0.40
codegen_flags: <defaults>
</compile_context>

<pallas_src>
import functools
import math

import jax
import jax.numpy as jnp
from jax import lax
from jax.experimental import pallas as pl
from jax.experimental.pallas import tpu as pltpu

# 32 MiB: a raise over the v5e default (16 MiB), equal to the v6e default, and safely
# half of the 64 MiB physical VMEM of a v7x TensorCore.
_VMEM_LIMIT = 32 * 1024 * 1024


def _choose_tile(dim, target, align):
    """Largest tile <= target that is a multiple of `align` and divides `dim`;
    falls back to the full dim (small test shapes / awkward sizes)."""
    if dim <= target:
        return dim
    t = (target // align) * align
    while t >= align:
        if dim % t == 0:
            return t
        t -= align
    return dim


def _bf16_exp_ok():
    """bf16 EUP path exists on v6e / v7x; v5e (and older / unknown) must stay f32."""
    try:
        kind = jax.devices()[0].device_kind.lower()
    except Exception:
        return False
    return ("v6" in kind) or ("v7" in kind)


# ---------------------------------------------------------------------------
# Grouped / tiled linear:  out[g] = x @ w[g] + b[g]
# ---------------------------------------------------------------------------
def _grouped_linear_kernel_single(x_ref, w_ref, b_ref, o_ref):
    # Whole K dimension in one tile: no accumulator scratch, output written once.
    o_ref[0] = (jnp.dot(x_ref[...], w_ref[0], preferred_element_type=jnp.float32)
                + b_ref[0]).astype(o_ref.dtype)


def _grouped_linear_kernel_acc(x_ref, w_ref, b_ref, o_ref, acc_ref):
    kk = pl.program_id(3)

    @pl.when(kk == 0)
    def _init():
        acc_ref[...] = jnp.zeros_like(acc_ref)

    # bf16 operands, f32 accumulation on the MXU; weight already (K, N) -> no .T
    acc_ref[...] += jnp.dot(x_ref[...], w_ref[0], preferred_element_type=jnp.float32)

    @pl.when(kk == pl.num_programs(3) - 1)
    def _finalize():
        o_ref[0] = (acc_ref[...] + b_ref[0]).astype(o_ref.dtype)


def pallas_grouped_linear(x2d, w_gkn, b_g1n, out_dtype,
                          tm_target=256, tn_target=512, tk_target=512):
    """x2d: (M, K) bf16; w_gkn: (G, K, N) bf16 (pre-transposed); b_g1n: (G, 1, N) f32.
    Returns (G, M, N).  G lets one pallas_call run the fused Q/K/V (or K/V) projection."""
    M, K = x2d.shape
    G, K2, N = w_gkn.shape
    assert K2 == K
    tm = _choose_tile(M, tm_target, 16)                 # bf16: 16 rows / sublane group
    tn = N if N <= 1024 else _choose_tile(N, tn_target, 128)
    tk = K if K <= 1024 else _choose_tile(K, tk_target, 128)

    if tk == K:
        # K grid axis vanishes: no accumulator scratch, x read once per row tile.
        return pl.pallas_call(
            _grouped_linear_kernel_single,
            out_shape=jax.ShapeDtypeStruct((G, M, N), out_dtype),
            grid_spec=pltpu.PrefetchScalarGridSpec(
                num_scalar_prefetch=0,
                grid=(M // tm, G, N // tn),
                in_specs=[
                    pl.BlockSpec((tm, tk), lambda i, g, j: (i, 0)),
                    pl.BlockSpec((1, tk, tn), lambda i, g, j: (g, 0, j)),
                    pl.BlockSpec((1, 1, tn), lambda i, g, j: (g, 0, j)),
                ],
                out_specs=pl.BlockSpec((1, tm, tn), lambda i, g, j: (g, i, j)),
            ),
            compiler_params=pltpu.CompilerParams(
                dimension_semantics=("parallel", "parallel", "parallel"),
                vmem_limit_bytes=_VMEM_LIMIT,
            ),
        )(x2d, w_gkn, b_g1n)

    grid = (M // tm, G, N // tn, K // tk)
    return pl.pallas_call(
        _grouped_linear_kernel_acc,
        out_shape=jax.ShapeDtypeStruct((G, M, N), out_dtype),
        grid_spec=pltpu.PrefetchScalarGridSpec(
            num_scalar_prefetch=0,
            grid=grid,
            in_specs=[
                pl.BlockSpec((tm, tk), lambda i, g, j, k: (i, k)),
                pl.BlockSpec((1, tk, tn), lambda i, g, j, k: (g, k, j)),
                pl.BlockSpec((1, 1, tn), lambda i, g, j, k: (g, 0, j)),
            ],
            out_specs=pl.BlockSpec((1, tm, tn), lambda i, g, j, k: (g, i, j)),
            scratch_shapes=[pltpu.VMEM((tm, tn), jnp.float32)],
        ),
        compiler_params=pltpu.CompilerParams(
            dimension_semantics=("parallel", "parallel", "parallel", "arbitrary"),
            vmem_limit_bytes=_VMEM_LIMIT,
        ),
    )(x2d, w_gkn, b_g1n)


# ---------------------------------------------------------------------------
# Flash-style multi-head attention (per-head lane slices, length-based mask)
# ---------------------------------------------------------------------------
def _mha_flash_kernel(lens_ref, q_ref, k_ref, v_ref, o_ref,
                      m_sc, l_sc, acc_sc, *, num_head, d_k, exp_dtype):
    b = pl.program_id(0)
    ki = pl.program_id(2)
    tkv = k_ref.shape[2]
    seq_len = lens_ref[b]
    tile_start = ki * tkv

    @pl.when(ki == 0)
    def _init():
        m_sc[...] = jnp.full_like(m_sc, -jnp.inf)
        l_sc[...] = jnp.zeros_like(l_sc)
        acc_sc[...] = jnp.zeros_like(acc_sc)

    # Skip fully padded key tiles entirely: no matmuls, no exps, no selects.
    @pl.when(tile_start < seq_len)
    def _attend():
        # Key-padding mask rebuilt in-kernel from per-batch lengths (SMEM scalar
        # prefetch) -- the dense (B, Sq, Sk) mask never touches HBM.
        kv_pos = tile_start + lax.broadcasted_iota(jnp.int32, (1, tkv), 1)
        kv_valid = kv_pos < seq_len                                   # (1, tkv)
        # ones matrix used to push the softmax row-sum onto the MXU (XLU relief);
        # d_k-wide so the running sum stays lane-replicated (elementwise finalize).
        ones_k = jnp.ones((tkv, d_k), jnp.bfloat16)

        # Short statically-unrolled loop over heads; per-head static LANE slices of the
        # (tq, H*d_k) blocks avoid the (tq,H,d_k) reshape relayout entirely.
        for h in range(num_head):
            sl = slice(h * d_k, (h + 1) * d_k)
            q_h = q_ref[0, 0, :, sl]                                  # (tq, d_k) bf16
            k_h = k_ref[0, 0, :, sl]                                  # (tkv, d_k) bf16
            v_h = v_ref[0, 0, :, sl]                                  # (tkv, d_k) bf16

            # scores: contract the shared last dim (no K transpose); f32 accumulation.
            # 1/sqrt(d_k) is already folded into the query projection weights.
            s_h = lax.dot_general(q_h, k_h, (((1,), (1,)), ((), ())),
                                  preferred_element_type=jnp.float32)  # (tq, tkv)
            # TODO(synk): the select also runs on fully-valid tiles (cheap VPU filler;
            # branch-splitting it would double the unrolled kernel body).
            s_h = jnp.where(kv_valid, s_h, jnp.float32(-1e9))

            # online softmax; running statistics stay f32 (v5e-safe)
            m_prev = m_sc[h]                                          # (tq, 1)
            m_new = jnp.maximum(m_prev, jnp.max(s_h, axis=-1, keepdims=True))
            alpha = jnp.exp(m_prev - m_new)                           # (tq, 1) f32
            # exp in bf16 on v6e/v7x (bf16 EUP, ~2x rate); f32 on v5e
            p = jnp.exp((s_h - m_new).astype(exp_dtype)).astype(jnp.bfloat16)

            pv = jnp.dot(p, v_h, preferred_element_type=jnp.float32)      # (tq, d_k)
            ps = jnp.dot(p, ones_k, preferred_element_type=jnp.float32)   # row sums (repl.)
            acc_sc[h] = alpha * acc_sc[h] + pv
            l_sc[h] = alpha * l_sc[h] + ps
            m_sc[h] = m_new

    @pl.when(ki == pl.num_programs(2) - 1)
    def _finalize():
        # TODO(synk): dropout on the attention probabilities omitted (eval-mode identity);
        # a batch with lens == 0 emits zeros instead of the reference's uniform-softmax mean.
        for h in range(num_head):
            inv_l = pl.reciprocal(jnp.maximum(l_sc[h], 1e-20), approx=True)  # EUP, ~free
            # per-head lane-slice stores: no (tq, H*d_k) f32 temp, no H-way concatenate
            o_ref[0, :, h * d_k:(h + 1) * d_k] = (acc_sc[h] * inv_l).astype(o_ref.dtype)


def _q_slab_map(slab):
    def imap(b, qi, ki, lens_ref):
        return (slab, b, qi, 0)
    return imap


def _kv_slab_map(slab, tkv):
    def imap(b, qi, ki, lens_ref):
        # Clamp to the last key tile that contains valid keys: padded tail tiles are
        # never DMA'd (the repeated block index elides the copy); their compute is
        # skipped in-kernel anyway.
        n_valid_tiles = (lens_ref[b] + (tkv - 1)) // tkv
        last = jnp.maximum(n_valid_tiles - 1, 0)
        return (slab, b, jnp.minimum(ki, last), 0)
    return imap


def pallas_mha(q_arr, k_arr, v_arr, slabs, lens, num_head, d_k,
               out_dtype=jnp.bfloat16, tq_target=256, tkv_target=512):
    """q_arr/k_arr/v_arr: (G, B, S, H*d_k) bf16 slab arrays (may be the SAME fused array);
    `slabs` selects the leading slab of Q/K/V via the index_maps, so fused projection
    outputs are consumed with no XLA slices / head transposes.
    lens: (B,) int32 number of valid (prefix) keys per batch.  Returns (B, Sq, H*d_k)."""
    _, B, Sq, D = q_arr.shape
    Sk = k_arr.shape[2]
    assert D == num_head * d_k
    tq = _choose_tile(Sq, tq_target, 16)
    tkv = _choose_tile(Sk, tkv_target, 16)
    grid = (B, Sq // tq, Sk // tkv)
    exp_dtype = jnp.bfloat16 if _bf16_exp_ok() else jnp.float32
    kernel = functools.partial(_mha_flash_kernel, num_head=num_head, d_k=d_k,
                               exp_dtype=exp_dtype)
    return pl.pallas_call(
        kernel,
        out_shape=jax.ShapeDtypeStruct((B, Sq, D), out_dtype),
        grid_spec=pltpu.PrefetchScalarGridSpec(
            num_scalar_prefetch=1,
            grid=grid,
            in_specs=[
                pl.BlockSpec((1, 1, tq, D), _q_slab_map(slabs[0])),
                pl.BlockSpec((1, 1, tkv, D), _kv_slab_map(slabs[1], tkv)),
                pl.BlockSpec((1, 1, tkv, D), _kv_slab_map(slabs[2], tkv)),
            ],
            out_specs=pl.BlockSpec((1, tq, D),
                                   lambda b, qi, ki, lens_ref: (b, qi, 0)),
            scratch_shapes=[
                pltpu.VMEM((num_head, tq, 1), jnp.float32),     # running max  m
                pltpu.VMEM((num_head, tq, d_k), jnp.float32),   # running sum  l (lane-repl.)
                pltpu.VMEM((num_head, tq, d_k), jnp.float32),   # output accumulator
            ],
        ),
        compiler_params=pltpu.CompilerParams(
            dimension_semantics=("parallel", "parallel", "arbitrary"),
            vmem_limit_bytes=_VMEM_LIMIT,
        ),
    )(lens, q_arr, k_arr, v_arr)


# ---------------------------------------------------------------------------
# Module wrapper
# ---------------------------------------------------------------------------
class MultiHeadedAttentionPallas:
    def __init__(self, num_head, d_model, key, dropout=0.1):
        assert d_model % num_head == 0
        self.d_k = d_model // num_head
        self.h = num_head
        self.d_model = d_model
        ks = jax.random.split(key, 8)
        bound = 1.0 / math.sqrt(d_model)

        def init_linear(kw, kb):
            w = jax.random.uniform(kw, (d_model, d_model), jnp.float32, -bound, bound)
            b = jax.random.uniform(kb, (d_model,), jnp.float32, -bound, bound)
            return w, b

        # f32 master parameters (PyTorch nn.Linear layout: weight is (out, in))
        self.wq, self.bq = init_linear(ks[0], ks[1])
        self.wk, self.bk = init_linear(ks[2], ks[3])
        self.wv, self.bv = init_linear(ks[4], ks[5])
        self.wo, self.bo = init_linear(ks[6], ks[7])

        # Kernel copies: pre-transposed (K, N), bf16 for the MXU, and 1/sqrt(d_k)
        # folded into the query projection (done once at init).
        scale = 1.0 / math.sqrt(self.d_k)
        self.w_qkv = jnp.stack(
            [self.wq.T * scale, self.wk.T, self.wv.T]).astype(jnp.bfloat16)    # (3, D, D)
        self.b_qkv = jnp.stack(
            [(self.bq * scale)[None, :], self.bk[None, :], self.bv[None, :]])  # (3, 1, D) f32
        self.wo_g = self.wo.T.astype(jnp.bfloat16)[None]                       # (1, D, D)
        self.bo_g = self.bo[None, None, :]                                     # (1, 1, D) f32

    def __call__(self, query, key, value, mask):
        B, Sq, D = query.shape
        Sk = key.shape[1]
        H, d_k = self.h, self.d_k

        # O(S) key-padding info instead of shipping the dense (B, Sq, Sk) mask.
        # TODO(synk): only key-padding masks (identical across query rows/heads, valid
        # keys forming a prefix) are supported by this optimized path.
        lens = jnp.sum((mask[:, 0, :] != 0).astype(jnp.int32), axis=-1)

        if (query is key) and (key is value):
            # self-attention: fused QKV -- x is read once, one pallas_call, 3 GEMMs
            x_bf = query.astype(jnp.bfloat16).reshape(B * Sq, D)
            qkv = pallas_grouped_linear(x_bf, self.w_qkv, self.b_qkv, jnp.bfloat16)
            qkv = qkv.reshape(3, B, Sq, D)                    # metadata-only reshape
            x = pallas_mha(qkv, qkv, qkv, (0, 1, 2), lens, H, d_k)
        else:
            q = pallas_grouped_linear(query.astype(jnp.bfloat16).reshape(B * Sq, D),
                                      self.w_qkv[0:1], self.b_qkv[0:1], jnp.bfloat16)
            q4 = q.reshape(1, B, Sq, D)
            if key is value:
                # encoder-memory cross-attention: fused K/V projection (memory read once)
                kv = pallas_grouped_linear(key.astype(jnp.bfloat16).reshape(B * Sk, D),
                                           self.w_qkv[1:3], self.b_qkv[1:3], jnp.bfloat16)
                kv4 = kv.reshape(2, B, Sk, D)
                x = pallas_mha(q4, kv4, kv4, (0, 0, 1), lens, H, d_k)
            else:
                k = pallas_grouped_linear(key.astype(jnp.bfloat16).reshape(B * Sk, D),
                                          self.w_qkv[1:2], self.b_qkv[1:2], jnp.bfloat16)
                v = pallas_grouped_linear(value.astype(jnp.bfloat16).reshape(B * Sk, D),
                                          self.w_qkv[2:3], self.b_qkv[2:3], jnp.bfloat16)
                x = pallas_mha(q4, k.reshape(1, B, Sk, D), v.reshape(1, B, Sk, D),
                               (0, 0, 0), lens, H, d_k)

        # x is already (B, Sq, H*d_k): no head-merge transpose before the out projection
        out = pallas_grouped_linear(x.reshape(B * Sq, D), self.wo_g, self.bo_g,
                                    jnp.float32)
        return out[0].reshape(B, Sq, D)


# pure-JAX f32 reference (mirrors the PyTorch module)
def reference_mha(mod, query, key, value, mask):
    B, Sq, D = query.shape
    Sk = key.shape[1]
    H, d_k = mod.h, mod.d_k
    q = (query @ mod.wq.T + mod.bq).reshape(B, Sq, H, d_k).transpose(0, 2, 1, 3)
    k = (key @ mod.wk.T + mod.bk).reshape(B, Sk, H, d_k).transpose(0, 2, 1, 3)
    v = (value @ mod.wv.T + mod.bv).reshape(B, Sk, H, d_k).transpose(0, 2, 1, 3)
    scores = jnp.einsum("bhqd,bhkd->bhqk", q, k) / math.sqrt(d_k)
    scores = jnp.where(mask[:, None, :, :] == 0, -1e9, scores)
    p = jax.nn.softmax(scores, axis=-1)
    x = jnp.einsum("bhqk,bhkd->bhqd", p, v)
    x = x.transpose(0, 2, 1, 3).reshape(B, Sq, H * d_k)
    return x @ mod.wo.T + mod.bo


if __name__ == "__main__":
    B, S, D, H = 2, 8, 32, 4
    root = jax.random.PRNGKey(0)
    k_mod, k_q, k_k, k_v = jax.random.split(root, 4)

    mod = MultiHeadedAttentionPallas(H, D, k_mod)

    query = jax.random.normal(k_q, (B, S, D), jnp.float32)
    keyx = jax.random.normal(k_k, (B, S, D), jnp.float32)
    value = jax.random.normal(k_v, (B, S, D), jnp.float32)

    # deterministic padding mask: batch 0 attends to all 8 keys, batch 1 to first 6
    lens = jnp.array([8, 6], dtype=jnp.int32)
    key_valid = (jnp.arange(S)[None, :] < lens[:, None]).astype(jnp.float32)  # (B, Sk)
    mask = jnp.broadcast_to(key_valid[:, None, :], (B, S, S))                 # (B, Sq, Sk)

    # cross-attention with three distinct inputs -> fully un-fused projection path
    out_cross = jax.block_until_ready(mod(query, keyx, value, mask))
    ref_cross = reference_mha(mod, query, keyx, value, mask)
    assert out_cross.shape == (B, S, D)
    assert jnp.allclose(out_cross, ref_cross, atol=5e-2, rtol=5e-2), "cross-attn mismatch"

    # encoder-memory style call (key is value) -> fused K/V projection path
    out_kv = jax.block_until_ready(mod(query, keyx, keyx, mask))
    ref_kv = reference_mha(mod, query, keyx, keyx, mask)
    assert jnp.allclose(out_kv, ref_kv, atol=5e-2, rtol=5e-2), "kv-fused mismatch"

    # self-attention call exercises the fused-QKV fast path
    out_self = jax.block_until_ready(mod(query, query, query, mask))
    ref_self = reference_mha(mod, query, query, query, mask)
    assert jnp.allclose(out_self, ref_self, atol=5e-2, rtol=5e-2), "self-attn mismatch"

    print("KERNEL_OK")
</pallas_src>

<mosaic_0001>
module attributes {stable_mosaic.version = 11 : i64} {
  func.func @_grouped_linear_kernel_single(%arg0: i32, %arg1: i32, %arg2: i32, %arg3: memref<16x32xbf16, #tpu.memory_space<vmem>>, %arg4: memref<1x32x32xbf16, #tpu.memory_space<vmem>>, %arg5: memref<1x1x32xf32, #tpu.memory_space<vmem>>, %arg6: memref<1x16x32xbf16, #tpu.memory_space<vmem>>) attributes {dimension_semantics = [#tpu.dimension_semantics<parallel>, #tpu.dimension_semantics<parallel>, #tpu.dimension_semantics<parallel>], iteration_bounds = array<i64: 1, 1, 1>, scalar_prefetch = 0 : i64, scratch_operands = 0 : i64, tpu.core_type = #tpu.core_type<tc>, window_params = [{transform_indices = @transform_0, window_bounds = array<i64: 16, 32>}, {transform_indices = @transform_1, window_bounds = array<i64: 1, 32, 32>}, {transform_indices = @transform_2, window_bounds = array<i64: 1, 1, 32>}, {transform_indices = @transform_3, window_bounds = array<i64: 1, 16, 32>}]} {
    %c0 = arith.constant 0 : index
    %c0_0 = arith.constant 0 : index
    %0 = vector.load %arg3[%c0, %c0_0] : memref<16x32xbf16, #tpu.memory_space<vmem>>, vector<16x32xbf16>
    %c0_1 = arith.constant 0 : index
    %c0_2 = arith.constant 0 : index
    %c0_3 = arith.constant 0 : index
    %1 = vector.load %arg4[%c0_1, %c0_2, %c0_3] : memref<1x32x32xbf16, #tpu.memory_space<vmem>>, vector<1x32x32xbf16>
    %2 = vector.shape_cast %1 : vector<1x32x32xbf16> to vector<32x32xbf16>
    %cst = arith.constant dense<0.000000e+00> : vector<16x32xf32>
    %3 = tpu.matmul %0, %2, %cst {dimension_numbers = #tpu.dot_dimension_numbers<[1], [0], [0], [1], [0, 0, 1, 1], [], []>} : vector<16x32xbf16>, vector<32x32xbf16>, vector<16x32xf32> -> vector<16x32xf32>
    %c0_4 = arith.constant 0 : index
    %c0_5 = arith.constant 0 : index
    %c0_6 = arith.constant 0 : index
    %4 = vector.load %arg5[%c0_4, %c0_5, %c0_6] : memref<1x1x32xf32, #tpu.memory_space<vmem>>, vector<1x1x32xf32>
    %5 = vector.shape_cast %4 : vector<1x1x32xf32> to vector<1x32xf32>
    %6 = vector.broadcast %5 : vector<1x32xf32> to vector<16x32xf32>
    %7 = arith.addf %3, %6 : vector<16x32xf32>
    %8 = arith.truncf %7 : vector<16x32xf32> to vector<16x32xbf16>
    %c0_7 = arith.constant 0 : index
    %c0_8 = arith.constant 0 : index
    %c0_9 = arith.constant 0 : index
    %9 = vector.load %arg6[%c0_7, %c0_8, %c0_9] : memref<1x16x32xbf16, #tpu.memory_space<vmem>>, vector<1x16x32xbf16>
    %10 = vector.shape_cast %9 : vector<1x16x32xbf16> to vector<16x32xbf16>
    %11 = vector.shape_cast %8 : vector<16x32xbf16> to vector<1x16x32xbf16>
    tpu.vector_store %arg6[%c0_7, %c0_8, %c0_9], %11 {strides = array<i32>} : memref<1x16x32xbf16, #tpu.memory_space<vmem>>, vector<1x16x32xbf16>,
    return
  }
  func.func @transform_0(%arg0: i32, %arg1: i32, %arg2: i32) -> (i32, i32) {
    %c0_i32 = arith.constant 0 : i32
    %c0_i32_0 = arith.constant 0 : i32
    return %arg0, %c0_i32 : i32, i32
  }
  func.func @transform_1(%arg0: i32, %arg1: i32, %arg2: i32) -> (i32, i32, i32) {
    %c0_i32 = arith.constant 0 : i32
    %c0_i32_0 = arith.constant 0 : i32
    return %arg1, %c0_i32, %arg2 : i32, i32, i32
  }
  func.func @transform_2(%arg0: i32, %arg1: i32, %arg2: i32) -> (i32, i32, i32) {
    %c0_i32 = arith.constant 0 : i32
    %c0_i32_0 = arith.constant 0 : i32
    return %arg1, %c0_i32, %arg2 : i32, i32, i32
  }
  func.func @transform_3(%arg0: i32, %arg1: i32, %arg2: i32) -> (i32, i32, i32) {
    %c0_i32 = arith.constant 0 : i32
    return %arg1, %arg0, %arg2 : i32, i32, i32
  }
}

</mosaic_0001>

<bundles_post_ra>
// kernel: tpu_custom_call.1
= control target key start
LH: loop header
LB: loop body
LE: loop exit
PB: predicated region body
PF: predicated region fallthrough
CT: control target
= control target key end

     0   :  { %8 = vsyncpa [#allocation3], 0  ;;  %s292_s0 = inlined_call_operand.hbm [shape: bf16[16,32], index: 0, kind: input, shape index: {}]   ;;  %s293_s1 = inlined_call_operand.hbm [shape: bf16[1,32,32], index: 1, kind: input, shape index: {}]   ;;  %s294_s2 = inlined_call_operand.vmem [shape: f32[1,1,32], index: 2, kind: input, shape index: {}]   ;;  %s295_s3 = inlined_call_operand.hbm [shape: bf16[1,16,32], index: 3, kind: output, shape index: {}]  }
   0x1   :  { %9 = vsyncpa [#allocation6], 0 }
   0x2   :  { %10 = vsyncpa [#allocation4], 0  ;;  %s244_s12 = smov [#allocation2]  }
   0x3   :  { %s16_s13 = sshll.u32 %s244_s12, 4  ;;  %s17_s13 = int_to_ptr.vmem [resolvable:$true] %s16_s13 }
   0x4   :  { %s186_s14 = scalar_lea.vmem %s17_s13, 128  ;;  %p191_p1 = scmp.lt.s32.totalorder %s17_s13, %s17_s13 }
   0x5   :  { %p187_p0 = scmp.ne.s32.totalorder %s17_s13, %s186_s14  ;;  %p192_p2 = scmp.lt.s32.totalorder %s186_s14, %s186_s14 }
   0x7   :  { %p193_p3 = por %p192_p2, %p191_p1 }
   0x9   :  { %p194_p4 = pnand %p193_p3, %p187_p0 }
   0xb   :  { %197 = shalt.err (!%p194_p4)
}
   0xc   :  { %s245_s15 = smov 64   ;;  %s246_s16 = smov 4  }
   0xd   :  { %22 = dma.hbm_to_vmem [thread:$0]  %s292_s0, 128, %s17_s13, [#allocation3], %s245_s15, %s245_s15, %s246_s16  }
   0xe   :  { %s247_s19 = smov [#allocation5]  }
   0xf   :  { %s28_s20 = sshll.u32 %s247_s19, 4  ;;  %s29_s20 = int_to_ptr.vmem [resolvable:$true] %s28_s20 }
  0x10   :  { %s206_s21 = scalar_lea.vmem %s29_s20, 256  ;;  %p211_p6 = scmp.lt.s32.totalorder %s29_s20, %s29_s20 }
  0x11   :  { %p207_p5 = scmp.ne.s32.totalorder %s29_s20, %s206_s21  ;;  %p212_p7 = scmp.lt.s32.totalorder %s206_s21, %s206_s21 }
  0x13   :  { %p213_p8 = por %p212_p7, %p211_p6 }
  0x15   :  { %p214_p9 = pnand %p213_p8, %p207_p5 }
  0x17   :  { %217 = shalt.err (!%p214_p9)
}
  0x18   :  { %34 = dma.hbm_to_vmem [thread:$0]  %s293_s1, 256, %s29_s20, [#allocation6], %s245_s15, %s245_s15, %s246_s16  }
  0x19   :  { %238 = dma.done.wait [#allocation3], 128  }
  0x1a   :  { %239 = vsyncadd [#allocation3], 4294967168 }
  0x1b   :  { %240 = dma.done.wait [#allocation6], 256  }
  0x1c   :  { %241 = vsyncadd [#allocation6], 4294967040  ;;  %v248_v0 = vmov 0.0   ;;  %vm249_vm0 = vmmov 0   ;;  %v175_v1 = vld [vmem:[#allocation5 + $0x8] sm:$0xff]   ;;  %v176_v2 = vld [vmem:[#allocation5] sm:$0xff]  }
  0x1d   :  { %160 = vmatprep.subr.bf16.mxu0 %v248_v0  ;;  %164 = vmatprep.mubr.msk.bf16.mxu0 %vm249_vm0, %v248_v0  ;;  %v177_v3 = vld [vmem:[#allocation2] sm:$0xff]   ;;  %vm74_vm1 = vcmask 261120   ;;  %vm127_vm2 = vcmask 257024   ;;  %s250_s1 = smov [#allocation7]  }
  0x1e   :  { %161 = vmatpush3.bf16.msra.mxu0 %v175_v1  ;;  %v148_v4 = vld [vmem:[%s294_s2] ss:$0 sm:$0xff]  ;;  %s135_s25 = sshll.u32 %s250_s1, 4  ;;  %s136_s25 = int_to_ptr.vmem [resolvable:$true] %s135_s25 }
  0x1f   :  { %162 = vmatprep.subr.bf16.mxu0 %v248_v0  ;;  %s218_s26 = scalar_lea.vmem %s136_s25, 128  ;;  %p223_p11 = scmp.lt.s32.totalorder %s136_s25, %s136_s25 }
  0x20   :  { %p219_p10 = scmp.ne.s32.totalorder %s136_s25, %s218_s26  ;;  %p224_p12 = scmp.lt.s32.totalorder %s218_s26, %s218_s26 }
  0x22   :  { %163 = vmatpush3.bf16.msra.mxu0 %v176_v2  ;;  %p225_p13 = por %p224_p12, %p223_p11 }
  0x24   :  { %p226_p0 = pnand %p225_p13, %p219_p10 }
  0x25   :  { %165 = vmatmul.mubr.msk.bf16.vlgmr.msra.gmra.mxu0 %vm74_vm1, %v177_v3 }
  0xe5   :  { %v112_v5 = vpop.f32.mrf.mxu0 }
  0xe6   :  { %v113_v6 = vadd.f32 %v148_v4, %v112_v5 }
  0xe7   :  { %v166_v7 = vpop.f32.mrf.mxu0 }
  0xe8   :  { %v155_v8 = vpack.c.bf16 %v113_v6, %v113_v6 }
  0xe9   :  { %v115_v9 = vpop.f32.mrf.mxu0 }
  0xea   :  { %v116_v10 = vadd.f32 %v148_v4, %v115_v9  ;;  %128 = vst.msk [vmem:[#allocation7] sm:$0xf] %vm127_vm2, %v155_v8 }
  0xeb   :  { %v167_v11 = vpop.f32.mrf.mxu0 }
  0xec   :  { %v156_v12 = vpack.c.bf16 %v116_v10, %v116_v10 }
  0xee   :  { %129 = vst.msk [vmem:[#allocation7 + $0x4] sm:$0xf] %vm127_vm2, %v156_v12 }
  0xef   :  { %229 = shalt.err (!%p226_p0)
}
  0xf0   :  { %141 = dma.vmem_to_hbm [thread:$0]  %s136_s25, 128, %s295_s3, [#allocation4], %s245_s15, %s245_s15, %s246_s16  }
  0xf1   :  { %242 = dma.done.wait [#allocation4], 128  }
  0xf2   :  { %243 = vsyncadd [#allocation4], 4294967168 }
  0xf3   :  { %145 = vsyncpa [#allocation3], 1 }
  0xf4   :  { %146 = vsyncpa [#allocation6], 1 }
  0xf5   :  { %147 = vsyncpa [#allocation4], 1 }

</bundles_post_ra>
